<compile_context>
chip_gen: v7x
topology: tpu7x:2x2x1
jax: 0.10.0
libtpu: 0.0.40
codegen_flags: <defaults>
</compile_context>

<pallas_src>
import functools

import jax
import jax.numpy as jnp
from jax.experimental import pallas as pl
from jax.experimental.pallas import tpu as pltpu


def _round_up(x, m):
    return (x + m - 1) // m * m


def actor_critic_kernel(state_ref, action_ref, w1_ref, b1_ref, w2_ref, b2_ref,
                        out_ref):
    x = state_ref[...]                                               # (TB, S)

    # Fused first layer: [W1a | W1v] -> one MXU pass, one tanh (f32).
    h = jnp.tanh(
        jnp.dot(x, w1_ref[...], preferred_element_type=jnp.float32)
        + b1_ref[...])                                               # (TB, 2H) f32

    # Fused second layer: block-diag [[W2a, 0], [0, W2v]] -> one MXU pass.
    y = (jnp.dot(h.astype(w2_ref.dtype), w2_ref[...],
                 preferred_element_type=jnp.float32)
         + b2_ref[...])                                              # (TB, A+1) f32

    n_act = w2_ref.shape[1] - 1                                      # static
    logits = y[:, :n_act]                                            # (TB, A)
    value = y[:, n_act:n_act + 1]                                    # (TB, 1)

    # Numerically stable, *exact* softmax / log-softmax (no approx reciprocal).
    m = jnp.max(logits, axis=-1, keepdims=True)                      # (TB, 1)
    s = logits - m
    e = jnp.exp(s)                                                   # (TB, A)
    z = jnp.sum(e, axis=-1, keepdims=True)                           # (TB, 1)
    logprobs = s - jnp.log(z)                                        # (TB, A)
    probs = e / z                                                    # exact

    # Categorical.log_prob(action): one-hot gather via lane iota compare.
    # Note: an out-of-range action yields log-prob 0 (silent), unlike torch.
    act = action_ref[...]                                            # (TB, 1) i32
    lane = jax.lax.broadcasted_iota(jnp.int32, logits.shape, 1)
    onehot = (lane == act).astype(jnp.float32)
    logp = jnp.sum(onehot * logprobs, axis=-1, keepdims=True)        # (TB, 1)

    # Categorical.entropy() = -sum p * log p
    ent = -jnp.sum(probs * logprobs, axis=-1, keepdims=True)         # (TB, 1)

    # Narrow 8-lane output slab: lane 0 = logp, 1 = value, 2 = entropy, rest 0.
    # Writing every lane of the block keeps the double-buffered output clean.
    out_lane = jax.lax.broadcasted_iota(jnp.int32, out_ref.shape, 1)
    out_ref[...] = jnp.where(out_lane == 0, logp,
                   jnp.where(out_lane == 1, value,
                   jnp.where(out_lane == 2, ent, 0.0)))


def pack_params(p, matmul_dtype):
    """Fuse actor/critic weights: [W1a|W1v], block-diag([W2a, W2v])."""
    H = p["w1a"].shape[1]
    A = p["w2a"].shape[1]
    w1 = jnp.concatenate([p["w1a"], p["w1v"]], axis=1).astype(matmul_dtype)
    b1 = jnp.concatenate([p["b1a"], p["b1v"]], axis=1).astype(jnp.float32)
    w2 = jnp.zeros((2 * H, A + 1), jnp.float32)
    w2 = w2.at[:H, :A].set(p["w2a"]).at[H:, A:].set(p["w2v"])
    w2 = w2.astype(matmul_dtype)                                     # (2H, A+1)
    b2 = jnp.concatenate([p["b2a"], p["b2v"]], axis=1).astype(jnp.float32)
    return w1, b1, w2, b2


@functools.partial(jax.jit, static_argnames=("tile_b", "matmul_dtype"))
def actor_critic_evaluate(state, action, params, *, tile_b=2048,
                          matmul_dtype=jnp.bfloat16):
    """Pallas-backed equivalent of ActorCritic.evaluate(state, action)."""
    B, S = state.shape
    # NOTE: packing / casting is cheap; in a training loop cache the packed
    # params and keep the rollout buffer in matmul_dtype to avoid the convert.
    w1, b1, w2, b2 = pack_params(params, matmul_dtype)
    H2 = w1.shape[1]      # 2 * hidden
    A1 = w2.shape[1]      # action_dim + 1

    state_in = state.astype(matmul_dtype)
    action2d = action.astype(jnp.int32).reshape(B, 1)

    # Batch tile: multiple of 8 sublanes, capped so the grid has >= 2 steps
    # (lets ("parallel",) shard the batch across both v7x TensorCores).
    half = _round_up(-(-B // 2), 8)
    tb = min(_round_up(max(tile_b, 8), 8), half)
    grid = (pl.cdiv(B, tb),)   # no host-side padding; edge block is masked

    out = pl.pallas_call(
        actor_critic_kernel,
        out_shape=jax.ShapeDtypeStruct((B, 8), jnp.float32),
        grid_spec=pltpu.PrefetchScalarGridSpec(
            num_scalar_prefetch=0,
            grid=grid,
            in_specs=[
                pl.BlockSpec((tb, S), lambda i: (i, 0)),      # state tile
                pl.BlockSpec((tb, 1), lambda i: (i, 0)),      # action tile
                pl.BlockSpec((S, H2), lambda i: (0, 0)),      # fused W1 (resident)
                pl.BlockSpec((1, H2), lambda i: (0, 0)),      # fused b1 (resident)
                pl.BlockSpec((H2, A1), lambda i: (0, 0)),     # fused W2 (resident)
                pl.BlockSpec((1, A1), lambda i: (0, 0)),      # fused b2 (resident)
            ],
            out_specs=pl.BlockSpec((tb, 8), lambda i: (i, 0)),
        ),
        compiler_params=pltpu.CompilerParams(
            dimension_semantics=("parallel",),   # megacore sharding on v7x
        ),
    )(state_in, action2d, w1, b1, w2, b2)

    # torch: (action_logprobs, torch.squeeze(state_value), dist_entropy)
    return out[:, 0], out[:, 1], out[:, 2]


def init_params(key, state_dim, hidden, action_dim):
    """Deterministic nn.Linear-style init: U(-1/sqrt(fan_in), 1/sqrt(fan_in))."""
    ks = jax.random.split(key, 8)

    def lin(kw, kb, fan_in, fan_out):
        bound = 1.0 / jnp.sqrt(jnp.float32(fan_in))
        w = jax.random.uniform(kw, (fan_in, fan_out), jnp.float32, -bound, bound)
        b = jax.random.uniform(kb, (1, fan_out), jnp.float32, -bound, bound)
        return w, b

    w1a, b1a = lin(ks[0], ks[1], state_dim, hidden)
    w2a, b2a = lin(ks[2], ks[3], hidden, action_dim)
    w1v, b1v = lin(ks[4], ks[5], state_dim, hidden)
    w2v, b2v = lin(ks[6], ks[7], hidden, 1)
    return dict(w1a=w1a, b1a=b1a, w2a=w2a, b2a=b2a,
                w1v=w1v, b1v=b1v, w2v=w2v, b2v=b2v)


def reference_evaluate(state, action, p, matmul_dtype=None):
    """Pure-JAX reference mirroring the PyTorch forward.

    matmul_dtype=None   -> exact f32 reference (module semantics).
    matmul_dtype=bf16   -> mirrors the kernel's mixed-precision matmuls.
    """
    def dot(a, b):
        if matmul_dtype is not None:
            a = a.astype(matmul_dtype)
            b = b.astype(matmul_dtype)
        return jnp.dot(a, b, preferred_element_type=jnp.float32)

    h_a = jnp.tanh(dot(state, p["w1a"]) + p["b1a"])
    logits = dot(h_a, p["w2a"]) + p["b2a"]
    logp_all = jax.nn.log_softmax(logits, axis=-1)
    probs = jnp.exp(logp_all)
    logp = jnp.take_along_axis(logp_all, action[:, None].astype(jnp.int32),
                               axis=-1)[:, 0]
    ent = -jnp.sum(probs * logp_all, axis=-1)
    h_v = jnp.tanh(dot(state, p["w1v"]) + p["b1v"])
    value = (dot(h_v, p["w2v"]) + p["b2v"])[:, 0]
    return logp, value, ent


if __name__ == "__main__":
    # Small demo shapes; tile_b=8 exercises a multi-step grid plus a masked
    # (incomplete) edge block, since 20 is not a multiple of 8.
    B, STATE_DIM, HIDDEN, ACTION_DIM = 20, 16, 32, 4

    key = jax.random.PRNGKey(0)
    k_state, k_act, k_params = jax.random.split(key, 3)

    state = jax.random.normal(k_state, (B, STATE_DIM), jnp.float32)
    action = jax.random.randint(k_act, (B,), 0, ACTION_DIM, jnp.int32)
    params = init_params(k_params, STATE_DIM, HIDDEN, ACTION_DIM)

    r_logp, r_value, r_ent = reference_evaluate(state, action, params)

    # 1) f32-matmul path: exact module semantics, tight tolerance.
    logp32, value32, ent32 = actor_critic_evaluate(
        state, action, params, tile_b=8, matmul_dtype=jnp.float32)
    jax.block_until_ready((logp32, value32, ent32))
    assert jnp.allclose(logp32, r_logp, atol=1e-4), "f32 log_prob mismatch"
    assert jnp.allclose(value32, r_value, atol=1e-4), "f32 value mismatch"
    assert jnp.allclose(ent32, r_ent, atol=1e-4), "f32 entropy mismatch"

    # 2) default bf16-matmul path: matches a mixed-precision reference tightly
    #    and the pure-f32 reference to bf16-level accuracy.
    logp, value, ent = actor_critic_evaluate(state, action, params, tile_b=8)
    jax.block_until_ready((logp, value, ent))
    m_logp, m_value, m_ent = reference_evaluate(
        state, action, params, matmul_dtype=jnp.bfloat16)
    assert jnp.allclose(logp, m_logp, atol=1e-4), "bf16 log_prob mismatch"
    assert jnp.allclose(value, m_value, atol=1e-4), "bf16 value mismatch"
    assert jnp.allclose(ent, m_ent, atol=1e-4), "bf16 entropy mismatch"
    assert jnp.allclose(logp, r_logp, atol=5e-2), "log_prob drifted from f32 ref"
    assert jnp.allclose(value, r_value, atol=5e-2), "value drifted from f32 ref"
    assert jnp.allclose(ent, r_ent, atol=5e-2), "entropy drifted from f32 ref"

    print("KERNEL_OK")
</pallas_src>

<mosaic_0001>
module attributes {stable_mosaic.version = 11 : i64} {
  func.func @actor_critic_kernel(%arg0: i32, %arg1: memref<8x16xf32, #tpu.memory_space<vmem>>, %arg2: memref<8x1xi32, #tpu.memory_space<vmem>>, %arg3: memref<16x64xf32, #tpu.memory_space<vmem>>, %arg4: memref<1x64xf32, #tpu.memory_space<vmem>>, %arg5: memref<64x5xf32, #tpu.memory_space<vmem>>, %arg6: memref<1x5xf32, #tpu.memory_space<vmem>>, %arg7: memref<8x8xf32, #tpu.memory_space<vmem>>) attributes {dimension_semantics = [#tpu.dimension_semantics<parallel>], iteration_bounds = array<i64: 3>, scalar_prefetch = 0 : i64, scratch_operands = 0 : i64, tpu.core_type = #tpu.core_type<tc>, window_params = [{transform_indices = @transform_0, window_bounds = array<i64: 8, 16>}, {transform_indices = @transform_1, window_bounds = array<i64: 8, 1>}, {pipeline_mode = #tpu.pipeline_mode<synchronous>, transform_indices = @transform_2, window_bounds = array<i64: 16, 64>}, {pipeline_mode = #tpu.pipeline_mode<synchronous>, transform_indices = @transform_3, window_bounds = array<i64: 1, 64>}, {pipeline_mode = #tpu.pipeline_mode<synchronous>, transform_indices = @transform_4, window_bounds = array<i64: 64, 5>}, {pipeline_mode = #tpu.pipeline_mode<synchronous>, transform_indices = @transform_5, window_bounds = array<i64: 1, 5>}, {transform_indices = @transform_6, window_bounds = array<i64: 8, 8>}]} {
    %c0 = arith.constant 0 : index
    %c0_0 = arith.constant 0 : index
    %0 = vector.load %arg1[%c0, %c0_0] : memref<8x16xf32, #tpu.memory_space<vmem>>, vector<8x16xf32>
    %c0_1 = arith.constant 0 : index
    %c0_2 = arith.constant 0 : index
    %1 = vector.load %arg3[%c0_1, %c0_2] : memref<16x64xf32, #tpu.memory_space<vmem>>, vector<16x64xf32>
    %cst = arith.constant dense<0.000000e+00> : vector<8x64xf32>
    %2 = tpu.matmul %0, %1, %cst {dimension_numbers = #tpu.dot_dimension_numbers<[1], [0], [0], [1], [0, 0, 1, 1], [], []>} : vector<8x16xf32>, vector<16x64xf32>, vector<8x64xf32> -> vector<8x64xf32>
    %c0_3 = arith.constant 0 : index
    %c0_4 = arith.constant 0 : index
    %3 = vector.load %arg4[%c0_3, %c0_4] : memref<1x64xf32, #tpu.memory_space<vmem>>, vector<1x64xf32>
    %4 = vector.broadcast %3 : vector<1x64xf32> to vector<8x64xf32>
    %5 = arith.addf %2, %4 : vector<8x64xf32>
    %6 = math.tanh %5 : vector<8x64xf32>
    %c0_5 = arith.constant 0 : index
    %c0_6 = arith.constant 0 : index
    %7 = vector.load %arg5[%c0_5, %c0_6] : memref<64x5xf32, #tpu.memory_space<vmem>>, vector<64x5xf32>
    %cst_7 = arith.constant dense<0.000000e+00> : vector<8x5xf32>
    %8 = tpu.matmul %6, %7, %cst_7 {dimension_numbers = #tpu.dot_dimension_numbers<[1], [0], [0], [1], [0, 0, 1, 1], [], []>} : vector<8x64xf32>, vector<64x5xf32>, vector<8x5xf32> -> vector<8x5xf32>
    %c0_8 = arith.constant 0 : index
    %c0_9 = arith.constant 0 : index
    %9 = vector.load %arg6[%c0_8, %c0_9] : memref<1x5xf32, #tpu.memory_space<vmem>>, vector<1x5xf32>
    %10 = vector.broadcast %9 : vector<1x5xf32> to vector<8x5xf32>
    %11 = arith.addf %8, %10 : vector<8x5xf32>
    %12 = vector.extract_strided_slice %11 {offsets = [0, 0], sizes = [8, 4], strides = [1, 1]} : vector<8x5xf32> to vector<8x4xf32>
    %13 = vector.extract_strided_slice %11 {offsets = [0, 4], sizes = [8, 1], strides = [1, 1]} : vector<8x5xf32> to vector<8x1xf32>
    %cst_10 = arith.constant dense<0xFF800000> : vector<8xf32>
    %14 = vector.multi_reduction <maximumf>, %12, %cst_10 [1] : vector<8x4xf32> to vector<8xf32>
    %15 = vector.shape_cast %14 : vector<8xf32> to vector<8x1xf32>
    %16 = vector.broadcast %15 : vector<8x1xf32> to vector<8x4xf32>
    %17 = arith.subf %12, %16 : vector<8x4xf32>
    %18 = math.exp %17 : vector<8x4xf32>
    %cst_11 = arith.constant dense<0.000000e+00> : vector<8xf32>
    %19 = vector.multi_reduction <add>, %18, %cst_11 [1] : vector<8x4xf32> to vector<8xf32>
    %20 = vector.shape_cast %19 : vector<8xf32> to vector<8x1xf32>
    %21 = math.log %20 : vector<8x1xf32>
    %22 = vector.broadcast %21 : vector<8x1xf32> to vector<8x4xf32>
    %23 = arith.subf %17, %22 : vector<8x4xf32>
    %24 = vector.broadcast %20 : vector<8x1xf32> to vector<8x4xf32>
    %25 = arith.divf %18, %24 : vector<8x4xf32>
    %c0_12 = arith.constant 0 : index
    %c0_13 = arith.constant 0 : index
    %26 = vector.load %arg2[%c0_12, %c0_13] : memref<8x1xi32, #tpu.memory_space<vmem>>, vector<8x1xi32>
    %27 = tpu.iota {dimensions = array<i32: 1>} : vector<8x4xi32>
    %28 = vector.broadcast %26 : vector<8x1xi32> to vector<8x4xi32>
    %29 = arith.cmpi eq, %27, %28 : vector<8x4xi32>
    %30 = arith.extui %29 : vector<8x4xi1> to vector<8x4xi32>
    %31 = arith.sitofp %30 : vector<8x4xi32> to vector<8x4xf32>
    %32 = arith.mulf %31, %23 : vector<8x4xf32>
    %cst_14 = arith.constant dense<0.000000e+00> : vector<8xf32>
    %33 = vector.multi_reduction <add>, %32, %cst_14 [1] : vector<8x4xf32> to vector<8xf32>
    %34 = vector.shape_cast %33 : vector<8xf32> to vector<8x1xf32>
    %35 = arith.mulf %25, %23 : vector<8x4xf32>
    %cst_15 = arith.constant dense<0.000000e+00> : vector<8xf32>
    %36 = vector.multi_reduction <add>, %35, %cst_15 [1] : vector<8x4xf32> to vector<8xf32>
    %37 = vector.shape_cast %36 : vector<8xf32> to vector<8x1xf32>
    %cst_16 = arith.constant 0.000000e+00 : f32
    %38 = vector.broadcast %cst_16 : f32 to vector<8x1xf32>
    %39 = arith.subf %38, %37 : vector<8x1xf32>
    %40 = tpu.iota {dimensions = array<i32: 1>} : vector<8x8xi32>
    %c0_i32 = arith.constant 0 : i32
    %41 = vector.broadcast %c0_i32 : i32 to vector<8x8xi32>
    %42 = arith.cmpi eq, %40, %41 : vector<8x8xi32>
    %c1_i32 = arith.constant 1 : i32
    %43 = vector.broadcast %c1_i32 : i32 to vector<8x8xi32>
    %44 = arith.cmpi eq, %40, %43 : vector<8x8xi32>
    %c2_i32 = arith.constant 2 : i32
    %45 = vector.broadcast %c2_i32 : i32 to vector<8x8xi32>
    %46 = arith.cmpi eq, %40, %45 : vector<8x8xi32>
    %cst_17 = arith.constant 0.000000e+00 : f32
    %47 = vector.shape_cast %39 : vector<8x1xf32> to vector<8x1xf32>
    %48 = vector.broadcast %47 : vector<8x1xf32> to vector<8x8xf32>
    %49 = vector.broadcast %cst_17 : f32 to vector<8x8xf32>
    %50 = arith.select %46, %48, %49 : vector<8x8xi1>, vector<8x8xf32>
    %51 = vector.shape_cast %13 : vector<8x1xf32> to vector<8x1xf32>
    %52 = vector.broadcast %51 : vector<8x1xf32> to vector<8x8xf32>
    %53 = arith.select %44, %52, %50 : vector<8x8xi1>, vector<8x8xf32>
    %54 = vector.shape_cast %34 : vector<8x1xf32> to vector<8x1xf32>
    %55 = vector.broadcast %54 : vector<8x1xf32> to vector<8x8xf32>
    %56 = arith.select %42, %55, %53 : vector<8x8xi1>, vector<8x8xf32>
    %c0_18 = arith.constant 0 : index
    %c0_19 = arith.constant 0 : index
    %57 = vector.load %arg7[%c0_18, %c0_19] : memref<8x8xf32, #tpu.memory_space<vmem>>, vector<8x8xf32>
    tpu.vector_store %arg7[%c0_18, %c0_19], %56 {strides = array<i32>} : memref<8x8xf32, #tpu.memory_space<vmem>>, vector<8x8xf32>,
    return
  }
  func.func @transform_0(%arg0: i32) -> (i32, i32) {
    %c0_i32 = arith.constant 0 : i32
    %c0_i32_0 = arith.constant 0 : i32
    return %arg0, %c0_i32 : i32, i32
  }
  func.func @transform_1(%arg0: i32) -> (i32, i32) {
    %c0_i32 = arith.constant 0 : i32
    %c0_i32_0 = arith.constant 0 : i32
    return %arg0, %c0_i32 : i32, i32
  }
  func.func @transform_2(%arg0: i32) -> (i32, i32) {
    %c0_i32 = arith.constant 0 : i32
    %c0_i32_0 = arith.constant 0 : i32
    %c0_i32_1 = arith.constant 0 : i32
    return %c0_i32, %c0_i32_0 : i32, i32
  }
  func.func @transform_3(%arg0: i32) -> (i32, i32) {
    %c0_i32 = arith.constant 0 : i32
    %c0_i32_0 = arith.constant 0 : i32
    %c0_i32_1 = arith.constant 0 : i32
    return %c0_i32, %c0_i32_0 : i32, i32
  }
  func.func @transform_4(%arg0: i32) -> (i32, i32) {
    %c0_i32 = arith.constant 0 : i32
    %c0_i32_0 = arith.constant 0 : i32
    %c0_i32_1 = arith.constant 0 : i32
    return %c0_i32, %c0_i32_0 : i32, i32
  }
  func.func @transform_5(%arg0: i32) -> (i32, i32) {
    %c0_i32 = arith.constant 0 : i32
    %c0_i32_0 = arith.constant 0 : i32
    %c0_i32_1 = arith.constant 0 : i32
    return %c0_i32, %c0_i32_0 : i32, i32
  }
  func.func @transform_6(%arg0: i32) -> (i32, i32) {
    %c0_i32 = arith.constant 0 : i32
    %c0_i32_0 = arith.constant 0 : i32
    return %arg0, %c0_i32 : i32, i32
  }
}

</mosaic_0001>

<bundles_post_ra>
// kernel: actor_critic_evaluate.1
= control target key start
LH: loop header
LB: loop body
LE: loop exit
PB: predicated region body
PF: predicated region fallthrough
CT: control target
= control target key end

     0   :  { %s688_s21 = smov 0   ;;  %s756_s0 = inlined_call_operand.vmem [shape: f32[20,16], index: 0, kind: input, shape index: {}]   ;;  %s757_s1 = inlined_call_operand.vmem [shape: s32[20,1], index: 1, kind: input, shape index: {}]   ;;  %s758_s2 = inlined_call_operand.vmem [shape: f32[16,64], index: 2, kind: input, shape index: {}]   ;;  %s759_s3 = inlined_call_operand.vmem [shape: f32[1,64], index: 3, kind: input, shape index: {}]   ;;  %s760_s4 = inlined_call_operand.vmem [shape: f32[64,5], index: 4, kind: input, shape index: {}]   ;;  %s761_s5 = inlined_call_operand.vmem [shape: f32[1,5], index: 5, kind: input, shape index: {}]   ;;  %s762_s6 = inlined_call_operand.vmem [shape: f32[20,8], index: 6, kind: output, shape index: {}]  }
   0x1 LB: > { %s549_s22 = sadd.s32 4294967295, %s646_s21   ;;  %p553_p0 = scmp.ge.s32.totalorder %s646_s21, 1  ;;  %s646_s21 = sphi %s688_s21, %s16_s21  }
   0x2   : > { %p220_p1 = scmp.lt.s32.totalorder %s646_s21, 4 }
   0x4   : > { %p221_p2 = pnand %p553_p0, %p220_p1 }
   0x5   : > { %v265_v0 = vld [vmem:[%s758_s2] sm:$0xff] (!%p221_p2)  ;;  %v266_v1 = vld [vmem:[%s758_s2 + $0x8] sm:$0xff] (!%p221_p2)  ;;  %p252_p3 = scmp.lt.s32.totalorder (!%p221_p2), %s549_s22, 2  ;;  %v648_v2 = vmov (!%p221_p2), 0.0|0.0   ;;  %vm649_vm0 = vmmov (!%p221_p2), 0   ;;  %v650_v4 = vmov (!%p221_p2), 0.0   ;;  %v454_v37 = vlaneseq (!%p221_p2) }
   0x6   : > { %224 = sbr.rel (%p221_p2) target bundleno = 928 (0x3a0), region = 44  ;;  %602 = vmatprep.subr.bf16.mxu0 (!%p221_p2), %v648_v2  ;;  %v603_v3 = vpack.c.bf16 (!%p221_p2), %v266_v1, %v265_v0  ;;  %580 = vmatprep.mubr.msk.f32.mxu0 (!%p221_p2), %vm649_vm0, %v650_v4  ;;  %v349_v5 = vld [vmem:[%s760_s4] sm:$0xff] (!%p221_p2)  ;;  %v350_v6 = vld [vmem:[%s760_s4 + $0x8] sm:$0xff] (!%p221_p2)  ;;  %vm274_vm1 = vcmask (!%p221_p2), 130048   ;;  %v351_v9 = vld [vmem:[%s760_s4 + $0x10] sm:$0xff] (!%p221_p2)  ;;  %vm364_vm2 = vcmask (!%p221_p2), 523264  }
   0x7   : > { %605 = vmatprep.subr.bf16.mxu1 (!%p221_p2), %v648_v2  ;;  %v606_v7 = vpack.c.bf16 (!%p221_p2), %v350_v6, %v349_v5  ;;  %599 = vmatprep.mubr.msk.f32.mxu1 (!%p221_p2), %vm649_vm0, %v650_v4  ;;  %v352_v10 = vld [vmem:[%s760_s4 + $0x18] sm:$0xff] (!%p221_p2)  ;;  %v353_v12 = vld [vmem:[%s760_s4 + $0x20] sm:$0xff] (!%p221_p2)  ;;  %v354_v13 = vld [vmem:[%s760_s4 + $0x28] sm:$0xff] (!%p221_p2)  ;;  %vm438_vm3 = vcmask (!%p221_p2), 31744   ;;  %v651_v28 = vmov (!%p221_p2), 0   ;;  %v652_v35 = vmov (!%p221_p2), 4  }
   0x8   : > { %604 = vmatpush3.bf16.msra.mxu0 (!%p221_p2), %v603_v3  ;;  %v609_v11 = vpack.c.bf16 (!%p221_p2), %v352_v10, %v351_v9  ;;  %v612_v14 = vpack.c.bf16 (!%p221_p2), %v354_v13, %v353_v12  ;;  %v355_v15 = vld [vmem:[%s760_s4 + $0x30] sm:$0xff] (!%p221_p2)  ;;  %v356_v16 = vld [vmem:[%s760_s4 + $0x38] sm:$0xff] (!%p221_p2)  ;;  %v557_v18 = vld [vmem:[%s759_s3] ss:$0 sm:$0xff] (!%p221_p2)  ;;  %630 = vset.pattern.permute.xlu1 (!%p221_p2), %v651_v28  ;;  %v455_v38 = vand.u32 (!%p221_p2), 127, %v454_v37  ;;  %vm482_vm8 = vcmask (!%p221_p2), 64512  }
   0x9   : > { %607 = vmatpush3.bf16.msra.mxu1 (!%p221_p2), %v606_v7  ;;  %v615_v17 = vpack.c.bf16 (!%p221_p2), %v356_v16, %v355_v15  ;;  %v559_v23 = vld [vmem:[%s761_s5] ss:$0 sm:$0xff] (!%p221_p2)  ;;  %631 = vset.pattern.permute.xlu0 (!%p221_p2), %v652_v35 }
   0xa   : > { %608 = vmatprep.subr.bf16.mxu1 (!%p221_p2), %v648_v2  ;;  %vm473_vm5 = vcmp.eq.s32.totalorder (!%p221_p2), %v455_v38, 2  ;;  %vm472_vm6 = vcmp.eq.s32.totalorder (!%p221_p2), %v455_v38, 1  ;;  %vm471_vm7 = vcmp.eq.s32.totalorder (!%p221_p2), %v455_v38, 0 }
   0xd   : > { %s764_s22 = smov (!%p252_p3, %s549_s22), 2  ;;  %610 = vmatpush3.bf16.msra.mxu1 %v609_v11 }
   0xe   : > { %s710_s7 = sshll.u32 %s764_s22, 3  ;;  %611 = vmatprep.subr.bf16.mxu1 %v648_v2 }
   0xf   : > { %s255_s10 = scalar_lea.vmem %s756_s0, %s710_s7  ;;  %s259_s30 = scalar_lea.vmem %s757_s1, %s710_s7 }
  0x10   : > { %v264_v8 = vld [vmem:[%s255_s10] sm:$0xff]  ;;  %s263_s10 = scalar_lea.vmem %s762_s6, %s710_s7 }
  0x11   : > { %581 = vmatmul.mubr.msk.f32.vlgmr.msra.gmra.mrb[0].mxu0 %vm274_vm1, %v264_v8  ;;  %613 = vmatpush3.bf16.msra.mxu1 %v612_v14  ;;  %v453_v29 = vld [vmem:[%s259_s30] sm:$0xff] }
  0x12   : > { %614 = vmatprep.subr.bf16.mxu1 %v648_v2  ;;  %457 = vperm.xlu1 %630, %v453_v29  }
  0x15   : > { %616 = vmatpush3.bf16.msra.mxu1 %v615_v17 }
  0x91   : > { %v458_v39 = vpop.permute.xlu1 %457 }
  0x92   : > { %vm459_vm4 = vcmp.eq.s32.totalorder %v455_v38, %v458_v39 }
  0x93   : > { %v561_v43 = vsel %vm459_vm4, 1.0, %v650_v4 }
  0xe4   : > { %v344_v19 = vpop.f32.mrb[0].mxu0 }
  0xe5   : > { %v345_v20 = vadd.f32 %v557_v18, %v344_v19  ;;  %v582_v21 = vpop.f32.mrb[1].mxu0 }
  0xe7   : > { %632 = vtanh.f32 %v345_v20 }
  0xf1   : > { %v633_v22 = vpop.eup %632 }
  0xf2   : > { %600 = vmatmul.mubr.msk.f32.vlgmr.msra.gmra.mrb[0].mxu1 %vm364_vm2, %v633_v22 }
 0x1c5   : > { %v434_v24 = vpop.f32.mrb[0].mxu1 }
 0x1c6   : > { %v435_v25 = vadd.f32 %v559_v23, %v434_v24  ;;  %v601_v26 = vpop.f32.mrb[1].mxu1 }
 0x1c8   : > { %v439_v27 = vsel %vm438_vm3, %v435_v25, -inf }
 0x1c9   : > { %440 = vmax.xlane.f32.xlu0 %v439_v27 }
 0x256   : > { %v441_v30 = vpop.xlane.xlu0 %440 }
 0x257   : > { %v442_v31 = vsub.f32 %v435_v25, %v441_v30 }
 0x259   : > { %v443_v32 = vmul.f32 1.442695, %v442_v31 }
 0x25b   : > { %634 = vpow2.f32 %v443_v32 }
 0x265   : > { %v635_v33 = vpop.eup %634 }
 0x266   : > { %v445_v34 = vsel %vm438_vm3, %v635_v33, 0.0 }
 0x267   : > { %446 = vadd.xlane.f32.xlu0 %v445_v34 }
 0x2f4   : > { %v447_v36 = vpop.xlane.xlu0 %446 }
 0x2f5   : > { %636 = vlog2.f32 %v447_v36 }
 0x2f6   : > { %638 = vrcp.f32 %v447_v36 }
 0x2ff   : > { %v637_v40 = vpop.eup %636 }
 0x300   : > { %v639_v41 = vpop.eup %638  ;;  %v449_v42 = vmul.f32 0.6931472, %v637_v40 }
 0x301   : > { %v452_v45 = vmul.f32 %v639_v41, %v635_v33 }
 0x302   : > { %v450_v44 = vsub.f32 %v442_v31, %v449_v42 }
 0x304   : > { %v466_v46 = vmul.f32 %v452_v45, %v450_v44  ;;  %v462_v47 = vmul.f32 %v561_v43, %v450_v44 }
 0x306   : > { %v467_v48 = vsel %vm438_vm3, %v466_v46, 0.0  ;;  %v463_v49 = vsel %vm438_vm3, %v462_v47, 0.0 }
 0x307   : > { %468 = vadd.xlane.f32.xlu1 %v467_v48  ;;  %464 = vadd.xlane.f32.xlu0 %v463_v49 }
 0x31d   : > { %477 = vperm.xlu0 %631, %v435_v25  }
 0x394   : > { %v469_v50 = vpop.xlane.xlu1 %468  ;;  %v465_v52 = vpop.xlane.xlu0 %464 }
 0x395   : > { %v470_v51 = vsub.f32 0.0, %v469_v50 }
 0x397   : > { %v474_v53 = vsel %vm473_vm5, %v470_v51, 0.0 }
 0x39c   : > { %v478_v54 = vpop.permute.xlu0 %477 }
 0x39d   : > { %v480_v55 = vsel %vm472_vm6, %v478_v54, %v474_v53 }
 0x39e   : > { %v481_v56 = vsel %vm471_vm7, %v465_v52, %v480_v55 }
 0x39f   : > { %483 = vst.msk [vmem:[%s263_s10] sm:$0xff] %vm482_vm8, %v481_v56 }
 0x3a0 PF: > { %s16_s21 = sadd.s32 1, %s646_s21  }
 0x3a1   : > { %p13_p4 = scmp.ge.s32.totalorder %s16_s21, 5  }
 0x3a3   :  { %15 = sbr.rel (!%p13_p4) target bundleno = 1 (0x1), region = 77 }

</bundles_post_ra>
